<compile_context>
chip_gen: v7x
topology: tpu7x:2x2x1
jax: 0.10.0
libtpu: 0.0.40
codegen_flags: <defaults>
</compile_context>

<pallas_src>
import functools

import jax
import jax.numpy as jnp
from jax.experimental import pallas as pl
from jax.experimental.pallas import tpu as pltpu

LOG_STD_MAX = 2.0
LOG_STD_MIN = -5.0


def _round_up(x, m):
    return ((x + m - 1) // m) * m


def _policy_kernel(obs_ref, w0_ref, b0_ref, w1_ref, b1_ref, w2_ref, b2_ref,
                   mean_ref):
    # In-kernel cast of the f32 obs tile to the compute dtype (identity when
    # compute_dtype == f32). Avoids an extra HBM pass in the wrapper.
    x = obs_ref[...].astype(w0_ref.dtype)
    # Layer 0: (tb, S) @ (S, Hp) + (1, Hp), ReLU   (f32 accumulation on MXU)
    h = jnp.dot(x, w0_ref[...], preferred_element_type=jnp.float32)
    h = jnp.maximum(h + b0_ref[...], 0.0)
    # Layer 1: (tb, Hp) @ (Hp, Hp) + (1, Hp), ReLU
    h = jnp.dot(h.astype(w1_ref.dtype), w1_ref[...],
                preferred_element_type=jnp.float32)
    h = jnp.maximum(h + b1_ref[...], 0.0)
    # Output layer: (tb, Hp) @ (Hp, A) + (1, A)  -> mean
    mean = jnp.dot(h.astype(w2_ref.dtype), w2_ref[...],
                   preferred_element_type=jnp.float32) + b2_ref[...]
    mean_ref[...] = mean.astype(mean_ref.dtype)


@functools.partial(jax.jit, static_argnames=("block_b", "compute_dtype"))
def gaussian_policy_forward(obs, params, block_b=8192,
                            compute_dtype=jnp.bfloat16):
    """Returns (mean, std, scale_tril) mimicking GaussianPolicy.forward."""
    w0, b0, w1, b1, w2, b2, log_std = params
    B, S = obs.shape
    H = w0.shape[1]
    A = w2.shape[1]

    # --- std path hoisted out of the kernel (no dependence on obs) ---------
    std = jnp.exp(jnp.clip(log_std, LOG_STD_MIN, LOG_STD_MAX))
    scale_tril = jnp.diag(std)

    # --- lane-pad hidden dim to exactly 128 (bit-identical: ReLU(0)=0) -----
    Hp = max(128, _round_up(H, 128))
    if Hp != H:
        w0 = jnp.pad(w0, ((0, 0), (0, Hp - H)))
        b0 = jnp.pad(b0, (0, Hp - H))
        w1 = jnp.pad(w1, ((0, Hp - H), (0, Hp - H)))
        b1 = jnp.pad(b1, (0, Hp - H))
        w2 = jnp.pad(w2, ((0, Hp - H), (0, 0)))

    # --- dtype prep: weights in compute_dtype, biases/obs/output stay f32 --
    cd_size = jnp.dtype(compute_dtype).itemsize
    w0c = w0.astype(compute_dtype)
    w1c = w1.astype(compute_dtype)
    w2c = w2.astype(compute_dtype)
    b0_2d = b0.reshape(1, Hp).astype(jnp.float32)
    b1_2d = b1.reshape(1, Hp).astype(jnp.float32)
    b2_2d = b2.reshape(1, A).astype(jnp.float32)

    # --- batch tile selection ----------------------------------------------
    # Per-row VMEM footprint: double-buffered f32 obs + mean tiles, plus the
    # live f32 hidden activations (two generations) and their bf16 copy.
    per_row_bytes = 2 * S * 4 + 2 * A * 4 + Hp * (4 + 4 + cd_size)
    const_bytes = 2 * ((S * Hp + Hp * Hp + Hp * A) * cd_size + (2 * Hp + A) * 4)

    # v7x-safe VMEM budget: keep the whole per-step footprint under ~28 MiB.
    budget = (28 << 20) - const_bytes
    tb_vmem_cap = max(8, (budget // per_row_bytes) // 8 * 8)
    # Keep >= 2 grid steps whenever possible so megacore ("parallel") has work
    # for both TensorCores on v7x (no effect on v5e/v6e).
    tb_two_steps = max(8, _round_up((B + 1) // 2, 8))
    tb = max(8, min(_round_up(int(block_b), 8), tb_vmem_cap, tb_two_steps))

    grid = (pl.cdiv(B, tb),)

    # --- generation-correct scoped VMEM limit (v5e default is only 16 MiB) --
    vmem_est = tb * per_row_bytes + const_bytes
    vmem_limit = int(min(max(vmem_est + (4 << 20), 16 << 20), 40 << 20))

    mean = pl.pallas_call(
        _policy_kernel,
        out_shape=jax.ShapeDtypeStruct((B, A), jnp.float32),
        grid_spec=pltpu.PrefetchScalarGridSpec(
            num_scalar_prefetch=0,
            grid=grid,
            in_specs=[
                pl.BlockSpec((tb, S), lambda i: (i, 0)),   # obs tile (f32)
                pl.BlockSpec((S, Hp), lambda i: (0, 0)),   # w0 (full, resident)
                pl.BlockSpec((1, Hp), lambda i: (0, 0)),   # b0
                pl.BlockSpec((Hp, Hp), lambda i: (0, 0)),  # w1
                pl.BlockSpec((1, Hp), lambda i: (0, 0)),   # b1
                pl.BlockSpec((Hp, A), lambda i: (0, 0)),   # w2
                pl.BlockSpec((1, A), lambda i: (0, 0)),    # b2
            ],
            out_specs=pl.BlockSpec((tb, A), lambda i: (i, 0)),  # mean tile
        ),
        compiler_params=pltpu.CompilerParams(
            dimension_semantics=("parallel",),   # batch axis shards across TCs
            vmem_limit_bytes=vmem_limit,
        ),
    )(obs, w0c, b0_2d, w1c, b1_2d, w2c, b2_2d)

    # TODO(synk): the MultivariateNormal distribution object itself has no
    # Pallas equivalent; we return its parameters (mean, std, scale_tril).
    return mean, std, scale_tril


def init_params(key, state_dim, act_dim, hidden_dim):
    """Deterministic synthetic init (shapes match GaussianPolicy.__init__)."""
    k0, k1, k2, k3, k4, k5 = jax.random.split(key, 6)
    # weights stored as (in, out) = torch Linear weight transposed
    w0 = jax.random.normal(k0, (state_dim, hidden_dim), jnp.float32) * 0.1
    b0 = jax.random.normal(k1, (hidden_dim,), jnp.float32) * 0.01
    w1 = jax.random.normal(k2, (hidden_dim, hidden_dim), jnp.float32) * 0.1
    b1 = jax.random.normal(k3, (hidden_dim,), jnp.float32) * 0.01
    w2 = jax.random.normal(k4, (hidden_dim, act_dim), jnp.float32) * 0.1
    b2 = jax.random.normal(k5, (act_dim,), jnp.float32) * 0.01
    log_std = jnp.zeros((act_dim,), jnp.float32)  # nn.Parameter(torch.zeros(act_dim))
    return (w0, b0, w1, b1, w2, b2, log_std)


def reference_forward(obs, params):
    w0, b0, w1, b1, w2, b2, log_std = params
    h = jnp.maximum(obs @ w0 + b0, 0.0)
    h = jnp.maximum(h @ w1 + b1, 0.0)
    mean = h @ w2 + b2
    std = jnp.exp(jnp.clip(log_std, LOG_STD_MIN, LOG_STD_MAX))
    return mean, std, jnp.diag(std)


if __name__ == "__main__":
    key = jax.random.PRNGKey(0)
    k_obs, k_params, k_big, k_mid = jax.random.split(key, 4)

    batch = 8
    state_dim = 16
    act_dim = 8
    hidden_dim = 32

    obs = jax.random.normal(k_obs, (batch, state_dim), jnp.float32)
    params = init_params(k_params, state_dim, act_dim, hidden_dim)
    mean_ref, std_ref, tril_ref = reference_forward(obs, params)

    # 1) Default path: bf16 weights / in-kernel cast, f32 accumulation.
    mean, std, scale_tril = gaussian_policy_forward(obs, params)
    jax.block_until_ready((mean, std, scale_tril))
    assert mean.shape == (batch, act_dim)
    assert jnp.allclose(mean, mean_ref, atol=2e-2, rtol=2e-2)
    assert jnp.allclose(std, std_ref, atol=1e-6)
    assert jnp.allclose(scale_tril, tril_ref, atol=1e-6)

    # 2) Exactness check: f32 compute path matches the reference tightly.
    mean32, std32, tril32 = gaussian_policy_forward(
        obs, params, compute_dtype=jnp.float32)
    jax.block_until_ready(mean32)
    assert jnp.allclose(mean32, mean_ref, atol=1e-5, rtol=1e-5)

    # 3) Larger, non-divisible batch with a small tile: multi-step grid with a
    #    masked ragged last block (no wrapper pad/slice).
    big_B = 1000
    obs_big = jax.random.normal(k_big, (big_B, state_dim), jnp.float32)
    mean_big, _, _ = gaussian_policy_forward(obs_big, params, block_b=256)
    jax.block_until_ready(mean_big)
    mean_big_ref, _, _ = reference_forward(obs_big, params)
    assert mean_big.shape == (big_B, act_dim)
    assert jnp.allclose(mean_big, mean_big_ref, atol=2e-2, rtol=2e-2)

    # 4) Default block_b with a mid-size batch: exercises the ">= 2 grid
    #    steps" cap (tb = round_up(cdiv(B,2),8)) plus a ragged last block.
    mid_B = 300
    obs_mid = jax.random.normal(k_mid, (mid_B, state_dim), jnp.float32)
    mean_mid, _, _ = gaussian_policy_forward(obs_mid, params)
    jax.block_until_ready(mean_mid)
    mean_mid_ref, _, _ = reference_forward(obs_mid, params)
    assert mean_mid.shape == (mid_B, act_dim)
    assert jnp.allclose(mean_mid, mean_mid_ref, atol=2e-2, rtol=2e-2)

    print("KERNEL_OK")
</pallas_src>

<mosaic_0001>
module attributes {stable_mosaic.version = 11 : i64} {
  func.func @_policy_kernel(%arg0: i32, %arg1: memref<8x16xf32, #tpu.memory_space<vmem>>, %arg2: memref<16x128xbf16, #tpu.memory_space<vmem>>, %arg3: memref<1x128xf32, #tpu.memory_space<vmem>>, %arg4: memref<128x128xbf16, #tpu.memory_space<vmem>>, %arg5: memref<1x128xf32, #tpu.memory_space<vmem>>, %arg6: memref<128x8xbf16, #tpu.memory_space<vmem>>, %arg7: memref<1x8xf32, #tpu.memory_space<vmem>>, %arg8: memref<8x8xf32, #tpu.memory_space<vmem>>) attributes {dimension_semantics = [#tpu.dimension_semantics<parallel>], iteration_bounds = array<i64: 1>, scalar_prefetch = 0 : i64, scratch_operands = 0 : i64, tpu.core_type = #tpu.core_type<tc>, window_params = [{transform_indices = @transform_0, window_bounds = array<i64: 8, 16>}, {pipeline_mode = #tpu.pipeline_mode<synchronous>, transform_indices = @transform_1, window_bounds = array<i64: 16, 128>}, {pipeline_mode = #tpu.pipeline_mode<synchronous>, transform_indices = @transform_2, window_bounds = array<i64: 1, 128>}, {pipeline_mode = #tpu.pipeline_mode<synchronous>, transform_indices = @transform_3, window_bounds = array<i64: 128, 128>}, {pipeline_mode = #tpu.pipeline_mode<synchronous>, transform_indices = @transform_4, window_bounds = array<i64: 1, 128>}, {pipeline_mode = #tpu.pipeline_mode<synchronous>, transform_indices = @transform_5, window_bounds = array<i64: 128, 8>}, {pipeline_mode = #tpu.pipeline_mode<synchronous>, transform_indices = @transform_6, window_bounds = array<i64: 1, 8>}, {transform_indices = @transform_7, window_bounds = array<i64: 8, 8>}]} {
    %c0 = arith.constant 0 : index
    %c0_0 = arith.constant 0 : index
    %0 = vector.load %arg1[%c0, %c0_0] : memref<8x16xf32, #tpu.memory_space<vmem>>, vector<8x16xf32>
    %1 = arith.truncf %0 : vector<8x16xf32> to vector<8x16xbf16>
    %c0_1 = arith.constant 0 : index
    %c0_2 = arith.constant 0 : index
    %2 = vector.load %arg2[%c0_1, %c0_2] : memref<16x128xbf16, #tpu.memory_space<vmem>>, vector<16x128xbf16>
    %cst = arith.constant dense<0.000000e+00> : vector<8x128xf32>
    %3 = tpu.matmul %1, %2, %cst {dimension_numbers = #tpu.dot_dimension_numbers<[1], [0], [0], [1], [0, 0, 1, 1], [], []>} : vector<8x16xbf16>, vector<16x128xbf16>, vector<8x128xf32> -> vector<8x128xf32>
    %c0_3 = arith.constant 0 : index
    %c0_4 = arith.constant 0 : index
    %4 = vector.load %arg3[%c0_3, %c0_4] : memref<1x128xf32, #tpu.memory_space<vmem>>, vector<1x128xf32>
    %5 = vector.broadcast %4 : vector<1x128xf32> to vector<8x128xf32>
    %6 = arith.addf %3, %5 : vector<8x128xf32>
    %cst_5 = arith.constant 0.000000e+00 : f32
    %7 = vector.broadcast %cst_5 : f32 to vector<8x128xf32>
    %8 = arith.maximumf %6, %7 : vector<8x128xf32>
    %9 = arith.truncf %8 : vector<8x128xf32> to vector<8x128xbf16>
    %c0_6 = arith.constant 0 : index
    %c0_7 = arith.constant 0 : index
    %10 = vector.load %arg4[%c0_6, %c0_7] : memref<128x128xbf16, #tpu.memory_space<vmem>>, vector<128x128xbf16>
    %cst_8 = arith.constant dense<0.000000e+00> : vector<8x128xf32>
    %11 = tpu.matmul %9, %10, %cst_8 {dimension_numbers = #tpu.dot_dimension_numbers<[1], [0], [0], [1], [0, 0, 1, 1], [], []>} : vector<8x128xbf16>, vector<128x128xbf16>, vector<8x128xf32> -> vector<8x128xf32>
    %c0_9 = arith.constant 0 : index
    %c0_10 = arith.constant 0 : index
    %12 = vector.load %arg5[%c0_9, %c0_10] : memref<1x128xf32, #tpu.memory_space<vmem>>, vector<1x128xf32>
    %13 = vector.broadcast %12 : vector<1x128xf32> to vector<8x128xf32>
    %14 = arith.addf %11, %13 : vector<8x128xf32>
    %cst_11 = arith.constant 0.000000e+00 : f32
    %15 = vector.broadcast %cst_11 : f32 to vector<8x128xf32>
    %16 = arith.maximumf %14, %15 : vector<8x128xf32>
    %17 = arith.truncf %16 : vector<8x128xf32> to vector<8x128xbf16>
    %c0_12 = arith.constant 0 : index
    %c0_13 = arith.constant 0 : index
    %18 = vector.load %arg6[%c0_12, %c0_13] : memref<128x8xbf16, #tpu.memory_space<vmem>>, vector<128x8xbf16>
    %cst_14 = arith.constant dense<0.000000e+00> : vector<8x8xf32>
    %19 = tpu.matmul %17, %18, %cst_14 {dimension_numbers = #tpu.dot_dimension_numbers<[1], [0], [0], [1], [0, 0, 1, 1], [], []>} : vector<8x128xbf16>, vector<128x8xbf16>, vector<8x8xf32> -> vector<8x8xf32>
    %c0_15 = arith.constant 0 : index
    %c0_16 = arith.constant 0 : index
    %20 = vector.load %arg7[%c0_15, %c0_16] : memref<1x8xf32, #tpu.memory_space<vmem>>, vector<1x8xf32>
    %21 = vector.broadcast %20 : vector<1x8xf32> to vector<8x8xf32>
    %22 = arith.addf %19, %21 : vector<8x8xf32>
    %c0_17 = arith.constant 0 : index
    %c0_18 = arith.constant 0 : index
    %23 = vector.load %arg8[%c0_17, %c0_18] : memref<8x8xf32, #tpu.memory_space<vmem>>, vector<8x8xf32>
    tpu.vector_store %arg8[%c0_17, %c0_18], %22 {strides = array<i32>} : memref<8x8xf32, #tpu.memory_space<vmem>>, vector<8x8xf32>,
    return
  }
  func.func @transform_0(%arg0: i32) -> (i32, i32) {
    %c0_i32 = arith.constant 0 : i32
    %c0_i32_0 = arith.constant 0 : i32
    return %arg0, %c0_i32 : i32, i32
  }
  func.func @transform_1(%arg0: i32) -> (i32, i32) {
    %c0_i32 = arith.constant 0 : i32
    %c0_i32_0 = arith.constant 0 : i32
    %c0_i32_1 = arith.constant 0 : i32
    return %c0_i32, %c0_i32_0 : i32, i32
  }
  func.func @transform_2(%arg0: i32) -> (i32, i32) {
    %c0_i32 = arith.constant 0 : i32
    %c0_i32_0 = arith.constant 0 : i32
    %c0_i32_1 = arith.constant 0 : i32
    return %c0_i32, %c0_i32_0 : i32, i32
  }
  func.func @transform_3(%arg0: i32) -> (i32, i32) {
    %c0_i32 = arith.constant 0 : i32
    %c0_i32_0 = arith.constant 0 : i32
    %c0_i32_1 = arith.constant 0 : i32
    return %c0_i32, %c0_i32_0 : i32, i32
  }
  func.func @transform_4(%arg0: i32) -> (i32, i32) {
    %c0_i32 = arith.constant 0 : i32
    %c0_i32_0 = arith.constant 0 : i32
    %c0_i32_1 = arith.constant 0 : i32
    return %c0_i32, %c0_i32_0 : i32, i32
  }
  func.func @transform_5(%arg0: i32) -> (i32, i32) {
    %c0_i32 = arith.constant 0 : i32
    %c0_i32_0 = arith.constant 0 : i32
    %c0_i32_1 = arith.constant 0 : i32
    return %c0_i32, %c0_i32_0 : i32, i32
  }
  func.func @transform_6(%arg0: i32) -> (i32, i32) {
    %c0_i32 = arith.constant 0 : i32
    %c0_i32_0 = arith.constant 0 : i32
    %c0_i32_1 = arith.constant 0 : i32
    return %c0_i32, %c0_i32_0 : i32, i32
  }
  func.func @transform_7(%arg0: i32) -> (i32, i32) {
    %c0_i32 = arith.constant 0 : i32
    %c0_i32_0 = arith.constant 0 : i32
    return %arg0, %c0_i32 : i32, i32
  }
}

</mosaic_0001>

<bundles_post_ra>
// kernel: gaussian_policy_forward.1
= control target key start
LH: loop header
LB: loop body
LE: loop exit
PB: predicated region body
PF: predicated region fallthrough
CT: control target
= control target key end

     0   :  { %v462_v1 = vmov 0.0   ;;  %vm45_vm0 = vcmask 130048   ;;  %vm463_vm1 = vmmov 0   ;;  %s600_s0 = inlined_call_operand.vmem [shape: f32[8,16], index: 0, kind: input, shape index: {}]   ;;  %s601_s1 = inlined_call_operand.vmem [shape: bf16[16,128], index: 1, kind: input, shape index: {}]   ;;  %s602_s2 = inlined_call_operand.vmem [shape: f32[1,128], index: 2, kind: input, shape index: {}]   ;;  %s603_s3 = inlined_call_operand.vmem [shape: bf16[128,128], index: 3, kind: input, shape index: {}]   ;;  %s604_s4 = inlined_call_operand.vmem [shape: f32[1,128], index: 4, kind: input, shape index: {}]   ;;  %s605_s5 = inlined_call_operand.vmem [shape: bf16[128,8], index: 5, kind: input, shape index: {}]   ;;  %s606_s6 = inlined_call_operand.vmem [shape: f32[1,8], index: 6, kind: input, shape index: {}]   ;;  %s607_s7 = inlined_call_operand.hbm [shape: f32[8,8], index: 7, kind: output, shape index: {}]  }
   0x1   :  { %v421_v0 = vld [vmem:[%s601_s1] sm:$0xff]   ;;  %372 = vmatprep.subr.bf16.mxu0 %v462_v1  ;;  %378 = vmatprep.subr.bf16.mxu1 %v462_v1  ;;  %v423_v5 = vld [vmem:[%s603_s3 + $0x8] sm:$0xff]   ;;  %v424_v6 = vld [vmem:[%s603_s3 + $0x10] sm:$0xff]  }
   0x2   :  { %v28_v2 = vld [vmem:[%s600_s0] sm:$0xff]  ;;  %373 = vmatpush3.bf16.msra.mxu0 %v421_v0  ;;  %374 = vmatprep.mubr.msk.bf16.mxu0 %vm463_vm1, %v462_v1  ;;  %v425_v7 = vld [vmem:[%s603_s3 + $0x18] sm:$0xff]  }
   0x3   :  { %v422_v3 = vld [vmem:[%s603_s3] sm:$0xff]   ;;  %v29_v4 = vpack.c.bf16 %v28_v2, %v28_v2  ;;  %394 = vmatprep.mubr.msk.bf16.mxu1 %vm463_vm1, %v462_v1  ;;  %398 = vmatprep.subr.bf16.mxu0 %v462_v1 }
   0x4   :  { %379 = vmatpush3.bf16.msra.mxu1 %v422_v3 }
   0x5   :  { %380 = vmatprep.subr.bf16.mxu1 %v462_v1  ;;  %375 = vmatmul.mubr.msk.bf16.vlgmr.msra.gmra.mrb[0].mxu0 %vm45_vm0, %v29_v4 }
   0x6   :  { %414 = vmatprep.mubr.msk.bf16.mxu0 %vm463_vm1, %v462_v1 }
   0x8   :  { %381 = vmatpush3.bf16.msra.mxu1 %v423_v5 }
   0x9   :  { %382 = vmatprep.subr.bf16.mxu1 %v462_v1 }
   0xc   :  { %383 = vmatpush3.bf16.msra.mxu1 %v424_v6 }
   0xd   :  { %384 = vmatprep.subr.bf16.mxu1 %v462_v1 }
   0xe   :  { %12 = vsyncpa [#allocation3], 0  ;;  %v426_v8 = vld [vmem:[%s603_s3 + $0x20] sm:$0xff]   ;;  %v427_v9 = vld [vmem:[%s603_s3 + $0x28] sm:$0xff]   ;;  %s464_s14 = smov [#allocation2]   ;;  %vm315_vm2 = vcmask 64512  }
   0xf   :  { %v428_v10 = vld [vmem:[%s603_s3 + $0x30] sm:$0xff]   ;;  %v429_v11 = vld [vmem:[%s603_s3 + $0x38] sm:$0xff]   ;;  %v430_v12 = vld [vmem:[%s605_s5] sm:$0xff]   ;;  %s323_s15 = sshll.u32 %s464_s14, 4  ;;  %s324_s15 = int_to_ptr.vmem [resolvable:$true] %s323_s15 }
  0x10   :  { %385 = vmatpush3.bf16.msra.mxu1 %v425_v7  ;;  %399 = vmatpush3.bf16.msra.mxu0 %v430_v12  ;;  %v431_v13 = vld [vmem:[%s605_s5 + $0x8] sm:$0xff]   ;;  %v432_v14 = vld [vmem:[%s605_s5 + $0x10] sm:$0xff]   ;;  %v433_v15 = vld [vmem:[%s605_s5 + $0x18] sm:$0xff]   ;;  %p443_p1 = scmp.lt.s32.totalorder %s324_s15, %s324_s15 }
  0x11   :  { %386 = vmatprep.subr.bf16.mxu1 %v462_v1  ;;  %400 = vmatprep.subr.bf16.mxu0 %v462_v1  ;;  %v434_v16 = vld [vmem:[%s605_s5 + $0x20] sm:$0xff]   ;;  %v435_v17 = vld [vmem:[%s605_s5 + $0x28] sm:$0xff]   ;;  %v436_v26 = vld [vmem:[%s605_s5 + $0x30] sm:$0xff]  }
  0x12   :  { %v331_v18 = vld [vmem:[%s602_s2] ss:$0 sm:$0xff]  ;;  %v437_v27 = vld [vmem:[%s605_s5 + $0x38] sm:$0xff]  }
  0x13   :  { %v334_v28 = vld [vmem:[%s604_s4] ss:$0 sm:$0xff]  ;;  %s438_s4 = scalar_lea.vmem %s324_s15, 128 }
  0x14   :  { %387 = vmatpush3.bf16.msra.mxu1 %v426_v8  ;;  %401 = vmatpush3.bf16.msra.mxu0 %v431_v13  ;;  %v343_v36 = vld [vmem:[%s606_s6] ss:$0 sm:$0xff]  ;;  %p439_p0 = scmp.ne.s32.totalorder %s324_s15, %s438_s4  ;;  %p444_p2 = scmp.lt.s32.totalorder %s438_s4, %s438_s4 }
  0x15   :  { %388 = vmatprep.subr.bf16.mxu1 %v462_v1  ;;  %402 = vmatprep.subr.bf16.mxu0 %v462_v1 }
  0x16   :  { %p445_p3 = por %p444_p2, %p443_p1 }
  0x18   :  { %389 = vmatpush3.bf16.msra.mxu1 %v427_v9  ;;  %403 = vmatpush3.bf16.msra.mxu0 %v432_v14  ;;  %p446_p4 = pnand %p445_p3, %p439_p0 }
  0x19   :  { %390 = vmatprep.subr.bf16.mxu1 %v462_v1  ;;  %404 = vmatprep.subr.bf16.mxu0 %v462_v1 }
  0x1c   :  { %391 = vmatpush3.bf16.msra.mxu1 %v428_v10  ;;  %405 = vmatpush3.bf16.msra.mxu0 %v433_v15 }
  0x1d   :  { %392 = vmatprep.subr.bf16.mxu1 %v462_v1  ;;  %406 = vmatprep.subr.bf16.mxu0 %v462_v1 }
  0x20   :  { %393 = vmatpush3.bf16.msra.mxu1 %v429_v11  ;;  %407 = vmatpush3.bf16.msra.mxu0 %v434_v16 }
  0x21   :  { %408 = vmatprep.subr.bf16.mxu0 %v462_v1 }
  0x24   :  { %409 = vmatpush3.bf16.msra.mxu0 %v435_v17 }
  0x25   :  { %410 = vmatprep.subr.bf16.mxu0 %v462_v1 }
  0x28   :  { %411 = vmatpush3.bf16.msra.mxu0 %v436_v26 }
  0x29   :  { %412 = vmatprep.subr.bf16.mxu0 %v462_v1 }
  0x2c   :  { %413 = vmatpush3.bf16.msra.mxu0 %v437_v27 }
  0xd8   :  { %v83_v19 = vpop.f32.mrb[0].mxu0 }
  0xd9   :  { %v84_v20 = vadd.f32 %v331_v18, %v83_v19  ;;  %v376_v21 = vpop.f32.mrb[1].mxu0 }
  0xda   :  { %v86_v22 = vpop.f32.mrb[2].mxu0 }
  0xdb   :  { %v89_v23 = vmax.f32 %v84_v20, 0.0  ;;  %v377_v24 = vpop.f32.mrb[3].mxu0 }
  0xdd   :  { %v90_v25 = vpack.c.bf16 %v89_v23, %v89_v23 }
  0xdf   :  { %395 = vmatmul.mubr.bf16.vlgmr.msra.gmra.mrb[0].mxu1 %v90_v25 }
 0x1b2   :  { %v196_v29 = vpop.f32.mrb[0].mxu1 }
 0x1b3   :  { %v197_v30 = vadd.f32 %v334_v28, %v196_v29  ;;  %v396_v31 = vpop.f32.mrb[1].mxu1 }
 0x1b4   :  { %v199_v32 = vpop.f32.mrb[2].mxu1 }
 0x1b5   :  { %v202_v33 = vmax.f32 %v197_v30, 0.0  ;;  %v397_v34 = vpop.f32.mrb[3].mxu1 }
 0x1b7   :  { %v203_v35 = vpack.c.bf16 %v202_v33, %v202_v33 }
 0x1b9   :  { %415 = vmatmul.mubr.bf16.vlgmr.msra.gmra.mrb[4].mxu0 %v203_v35 }
 0x28c   :  { %v309_v37 = vpop.f32.mrb[4].mxu0 }
 0x28d   :  { %v310_v38 = vadd.f32 %v343_v36, %v309_v37  ;;  %v416_v39 = vpop.f32.mrb[5].mxu0 }
 0x28e   :  { %v312_v40 = vpop.f32.mrb[6].mxu0 }
 0x28f   :  { %v417_v41 = vpop.f32.mrb[7].mxu0  ;;  %316 = vst.msk [vmem:[#allocation2] sm:$0xff] %vm315_vm2, %v310_v38 }
 0x290   :  { %449 = shalt.err (!%p446_p4)
}
 0x291   :  { %s450_s6 = scalar_lea.hbm %s607_s7, 128 }
 0x292   :  { %p451_p5 = scmp.ne.s32.totalorder %s607_s7, %s450_s6  ;;  %p454_p6 = scmp.lt.u32.totalorder %s450_s6, %s607_s7 }
 0x294   :  { %p456_p7 = pnand %p454_p6, %p451_p5 }
 0x296   :  { %459 = shalt.err (!%p456_p7)
}
 0x297   :  { %326 = dma.vmem_to_hbm [thread:$0]  %s324_s15, 128, %s607_s7, [#allocation3]  }
 0x298   :  { %460 = dma.done.wait [#allocation3], 128  }
 0x299   :  { %461 = vsyncadd [#allocation3], 4294967168 }
 0x29a   :  { %330 = vsyncpa [#allocation3], 1 }

</bundles_post_ra>
